<compile_context>
chip_gen: v7x
topology: tpu7x:2x2x1
jax: 0.10.0
libtpu: 0.0.40
codegen_flags: <defaults>
</compile_context>

<pallas_src>
import jax
import jax.numpy as jnp
from jax.experimental import pallas as pl
from jax.experimental.pallas import tpu as pltpu

_LANE = 128
_SUBLANE = 8
_TARGET_BLOCK_BYTES = 8 << 20        # ~8 MiB x-blocks (double-buffered in+out ~32 MiB)
_MEGACORE_MIN_BYTES = 2 << 20        # force >=2 grid blocks above this size
_VMEM_LIMIT_CAP = 48 << 20           # safe on v7x (64 MiB physical) and v5e/v6e


def _normalize_kernel(scale_ref, bias_ref, x_ref, o_ref):
    # scale_ref / bias_ref: (TR, 1) f32 per-row fused (1/std, -mean/std)
    # x_ref / o_ref:        (TR, TL) lane-dense tile
    x = x_ref[...].astype(jnp.float32)
    o_ref[...] = (x * scale_ref[...] + bias_ref[...]).astype(o_ref.dtype)


def _round_up(v, m):
    return ((v + m - 1) // m) * m


def _round_down(v, m):
    return (v // m) * m


def _pick_tiles(rows, L, itemsize, block_budget_bytes):
    """Pick (tr, tl) so the padded VMEM block stays within the byte budget.

    tl is a multiple of 128 (or full extent for tiny L) and does NOT need to
    divide L; the pl.cdiv grid masks only the final tail block.
    """
    budget = max(block_budget_bytes // itemsize, _SUBLANE * _LANE)

    # Lane (last) dim carries most of the block volume for NCHW images.
    # Size it against one sublane tile (8 rows) so the padded block fits the
    # budget even when rows < 8.
    if L <= _LANE:
        tl = L                                   # full extent (always legal)
    else:
        tl = min(_round_up(max(budget // _SUBLANE, _LANE), _LANE),
                 _round_up(L, _LANE))

    # Row (second-last) dim: full extent or a multiple of 8, sized so the
    # sublane-padded block stays within budget.
    tl_pad = _round_up(tl, _LANE)
    tr_cap = max(_SUBLANE, _round_down(budget // tl_pad, _SUBLANE))
    tr = rows if rows <= tr_cap else tr_cap
    return tr, tl


def _ensure_megacore_split(rows, L, tr, tl, itemsize):
    """Guarantee >=2 blocks on a parallel axis for inputs big enough to matter
    (v7x has 2 TensorCores; a single-step grid runs on one of them)."""
    if rows * L * itemsize <= _MEGACORE_MIN_BYTES:
        return tr, tl
    if pl.cdiv(rows, tr) * pl.cdiv(L, tl) >= 2:
        return tr, tl
    if rows >= 2 * _SUBLANE:
        tr = _round_up(pl.cdiv(rows, 2), _SUBLANE)
    elif L >= 2 * _LANE:
        tl = _round_up(pl.cdiv(L, 2), _LANE)
    return tr, tl


def normalize(x: jax.Array, mean: jax.Array, std: jax.Array) -> jax.Array:
    """(x - mean[c]) / std[c]; x is NCHW, mean/std are (C,)."""
    n, c, h, w = x.shape
    assert mean.shape == (c,) and std.shape == (c,)

    # Per-channel fused FMA coefficients, kept in f32 for accuracy on
    # narrow input dtypes (cast happens only at the final store).
    inv = (1.0 / std).astype(jnp.float32)            # 1/std
    shift = (-mean).astype(jnp.float32) * inv        # -mean/std

    rows, L = n * c, h * w
    itemsize = jnp.dtype(x.dtype).itemsize

    x2 = x.reshape(rows, L)                          # contiguous, lane-dense view
    scale_r = jnp.tile(inv, n).reshape(rows, 1)      # row r -> channel r % c
    bias_r = jnp.tile(shift, n).reshape(rows, 1)

    tr, tl = _pick_tiles(rows, L, itemsize, _TARGET_BLOCK_BYTES)
    tr, tl = _ensure_megacore_split(rows, L, tr, tl, itemsize)
    grid = (pl.cdiv(rows, tr), pl.cdiv(L, tl))       # j (lanes) is innermost

    # Explicit VMEM budget: double-buffered x-in + x-out blocks plus the tiny
    # scale/bias buffers, with padding and headroom, capped for v7x.
    blk_pad = _round_up(tr, 2 * _SUBLANE) * _round_up(tl, _LANE) * itemsize
    side_pad = 2 * 2 * _round_up(tr, 2 * _SUBLANE) * _LANE * 4
    vmem_limit = min(_VMEM_LIMIT_CAP,
                     max(32 << 20, 4 * blk_pad + side_pad + (4 << 20)))

    total = rows * L
    cost = pl.CostEstimate(
        flops=2 * total,
        bytes_accessed=2 * total * itemsize + 2 * rows * 4,
        transcendentals=0,
    )

    out2 = pl.pallas_call(
        _normalize_kernel,
        out_shape=jax.ShapeDtypeStruct((rows, L), x.dtype),
        grid=grid,
        in_specs=[
            pl.BlockSpec((tr, 1), lambda i, j: (i, 0)),    # scale (constant in j)
            pl.BlockSpec((tr, 1), lambda i, j: (i, 0)),    # bias  (constant in j)
            pl.BlockSpec((tr, tl), lambda i, j: (i, j)),   # x
        ],
        out_specs=pl.BlockSpec((tr, tl), lambda i, j: (i, j)),
        compiler_params=pltpu.CompilerParams(
            dimension_semantics=("parallel", "parallel"),
            vmem_limit_bytes=int(vmem_limit),
        ),
        cost_estimate=cost,
    )(scale_r, bias_r, x2)
    return out2.reshape(n, c, h, w)


if __name__ == "__main__":
    # Deterministic parameters from the module's __init__ (registered buffers).
    mean = jnp.array([0.485, 0.456, 0.406], dtype=jnp.float32)
    std = jnp.array([0.229, 0.224, 0.225], dtype=jnp.float32)

    # Small deterministic input: batch=2, channels=3 (fixed by mean/std),
    # spatial 16x16, NCHW like PyTorch.
    key = jax.random.PRNGKey(0)
    x = jax.random.uniform(key, (2, 3, 16, 16), dtype=jnp.float32)

    out = jax.block_until_ready(normalize(x, mean, std))

    # Reference check in plain JAX (original module semantics).
    ref = (x - mean.reshape(1, 3, 1, 1)) / std.reshape(1, 3, 1, 1)
    assert out.shape == x.shape and out.dtype == x.dtype
    assert jnp.allclose(out, ref, atol=1e-5, rtol=1e-5)

    print("KERNEL_OK")
</pallas_src>

<mosaic_0001>
module attributes {stable_mosaic.version = 11 : i64} {
  func.func @_normalize_kernel(%arg0: i32, %arg1: i32, %arg2: memref<6x1xf32, #tpu.memory_space<vmem>>, %arg3: memref<6x1xf32, #tpu.memory_space<vmem>>, %arg4: memref<6x256xf32, #tpu.memory_space<vmem>>, %arg5: memref<6x256xf32, #tpu.memory_space<vmem>>) attributes {dimension_semantics = [#tpu.dimension_semantics<parallel>, #tpu.dimension_semantics<parallel>], iteration_bounds = array<i64: 1, 1>, scalar_prefetch = 0 : i64, scratch_operands = 0 : i64, tpu.core_type = #tpu.core_type<tc>, window_params = [{transform_indices = @transform_0, window_bounds = array<i64: 6, 1>}, {transform_indices = @transform_1, window_bounds = array<i64: 6, 1>}, {transform_indices = @transform_2, window_bounds = array<i64: 6, 256>}, {transform_indices = @transform_3, window_bounds = array<i64: 6, 256>}]} {
    %c0 = arith.constant 0 : index
    %c0_0 = arith.constant 0 : index
    %0 = vector.load %arg4[%c0, %c0_0] : memref<6x256xf32, #tpu.memory_space<vmem>>, vector<6x256xf32>
    %c0_1 = arith.constant 0 : index
    %c0_2 = arith.constant 0 : index
    %1 = vector.load %arg2[%c0_1, %c0_2] : memref<6x1xf32, #tpu.memory_space<vmem>>, vector<6x1xf32>
    %2 = vector.broadcast %1 : vector<6x1xf32> to vector<6x256xf32>
    %3 = arith.mulf %0, %2 : vector<6x256xf32>
    %c0_3 = arith.constant 0 : index
    %c0_4 = arith.constant 0 : index
    %4 = vector.load %arg3[%c0_3, %c0_4] : memref<6x1xf32, #tpu.memory_space<vmem>>, vector<6x1xf32>
    %5 = vector.broadcast %4 : vector<6x1xf32> to vector<6x256xf32>
    %6 = arith.addf %3, %5 : vector<6x256xf32>
    %c0_5 = arith.constant 0 : index
    %c0_6 = arith.constant 0 : index
    %7 = vector.load %arg5[%c0_5, %c0_6] : memref<6x256xf32, #tpu.memory_space<vmem>>, vector<6x256xf32>
    tpu.vector_store %arg5[%c0_5, %c0_6], %6 {strides = array<i32>} : memref<6x256xf32, #tpu.memory_space<vmem>>, vector<6x256xf32>,
    return
  }
  func.func @transform_0(%arg0: i32, %arg1: i32) -> (i32, i32) {
    %c0_i32 = arith.constant 0 : i32
    %c0_i32_0 = arith.constant 0 : i32
    return %arg0, %c0_i32 : i32, i32
  }
  func.func @transform_1(%arg0: i32, %arg1: i32) -> (i32, i32) {
    %c0_i32 = arith.constant 0 : i32
    %c0_i32_0 = arith.constant 0 : i32
    return %arg0, %c0_i32 : i32, i32
  }
  func.func @transform_2(%arg0: i32, %arg1: i32) -> (i32, i32) {
    %c0_i32 = arith.constant 0 : i32
    return %arg0, %arg1 : i32, i32
  }
  func.func @transform_3(%arg0: i32, %arg1: i32) -> (i32, i32) {
    %c0_i32 = arith.constant 0 : i32
    return %arg0, %arg1 : i32, i32
  }
}

</mosaic_0001>

<bundles_post_ra>
// kernel: tpu_custom_call.1
= control target key start
LH: loop header
LB: loop body
LE: loop exit
PB: predicated region body
PF: predicated region fallthrough
CT: control target
= control target key end

     0   :  { %v76_v1 = vmov 0   ;;  %s122_s0 = inlined_call_operand.vmem [shape: f32[6,1], index: 0, kind: input, shape index: {}]   ;;  %s123_s1 = inlined_call_operand.vmem [shape: f32[6,1], index: 1, kind: input, shape index: {}]   ;;  %s124_s2 = inlined_call_operand.vmem [shape: f32[6,256], index: 2, kind: input, shape index: {}]   ;;  %s125_s3 = inlined_call_operand.hbm [shape: f32[6,256], index: 3, kind: output, shape index: {}]  }
   0x1   :  { %v17_v0 = vld [vmem:[%s122_s0] sm:$0x3f]  ;;  %51 = vset.pattern.permute.xlu0 %v76_v1 }
   0x2   :  { %8 = vsyncpa [#allocation3], 0  ;;  %20 = vperm.xlu0 %51, %v17_v0   ;;  %v25_v2 = vld [vmem:[%s123_s1] sm:$0x3f]  ;;  %v16_v5 = vld [vmem:[%s124_s2 + $0x8] sm:$0x3f] }
   0x3   :  { %v15_v4 = vld [vmem:[%s124_s2] sm:$0x3f]  ;;  %s77_s20 = smov [#allocation2]  }
   0x4   :  { %s41_s0 = sshll.u32 %s77_s20, 4  ;;  %s42_s0 = int_to_ptr.vmem [resolvable:$true] %s41_s0 }
   0x5   :  { %s52_s1 = scalar_lea.vmem %s42_s0, 256  ;;  %p57_p1 = scmp.lt.s32.totalorder %s42_s0, %s42_s0 }
   0x6   :  { %28 = vperm.xlu0 %51, %v25_v2   ;;  %p53_p0 = scmp.ne.s32.totalorder %s42_s0, %s52_s1  ;;  %p58_p2 = scmp.lt.s32.totalorder %s52_s1, %s52_s1 }
   0x8   :  { %p59_p3 = por %p58_p2, %p57_p1 }
   0xa   :  { %p60_p4 = pnand %p59_p3, %p53_p0 }
  0x81   :  { %v21_v3 = vpop.permute.xlu0 %20 }
  0x82   :  { %v23_v6 = vmul.f32 %v21_v3, %v15_v4  ;;  %v24_v7 = vmul.f32 %v21_v3, %v16_v5 }
  0x85   :  { %v29_v8 = vpop.permute.xlu0 %28 }
  0x86   :  { %v31_v9 = vadd.f32 %v29_v8, %v23_v6  ;;  %v32_v10 = vadd.f32 %v29_v8, %v24_v7 }
  0x88   :  { %33 = vst [vmem:[#allocation2] sm:$0x3f] %v31_v9  ;;  %34 = vst [vmem:[#allocation2 + $0x8] sm:$0x3f] %v32_v10 }
  0x89   :  { %63 = shalt.err (!%p60_p4)
}
  0x8a   :  { %s64_s2 = scalar_lea.hbm %s125_s3, 256 }
  0x8b   :  { %p65_p5 = scmp.ne.s32.totalorder %s125_s3, %s64_s2  ;;  %p68_p6 = scmp.lt.u32.totalorder %s64_s2, %s125_s3 }
  0x8d   :  { %p70_p7 = pnand %p68_p6, %p65_p5 }
  0x8f   :  { %73 = shalt.err (!%p70_p7)
}
  0x90   :  { %44 = dma.vmem_to_hbm [thread:$0]  %s42_s0, 256, %s125_s3, [#allocation3]  }
  0x91   :  { %74 = dma.done.wait [#allocation3], 256  }
  0x92   :  { %75 = vsyncadd [#allocation3], 4294967040 }
  0x93   :  { %48 = vsyncpa [#allocation3], 1 }

</bundles_post_ra>
